<compile_context>
chip_gen: v7x
topology: tpu7x:2x2x1
jax: 0.10.0
libtpu: 0.0.40
codegen_flags: <defaults>
</compile_context>

<pallas_src>
import jax
import jax.numpy as jnp
from jax.experimental import pallas as pl
from jax.experimental.pallas import tpu as pltpu

K = 3          # conv kernel size (3x3)
SUBLANE = 8    # f32 sublane count


def _is_multi_tc_chip():
    """Best-effort detection of a multi-TensorCore-per-chip part (v7x)."""
    try:
        kind = jax.devices()[0].device_kind.lower()
        return ("v7" in kind) or ("7x" in kind)
    except Exception:
        return False


def _make_conv3x3_flat_kernel(row_stride):
    """Kernel closure over the static input-plane row stride (= image width W)."""

    def kernel(w_ref, b_ref, x_ref, o_ref):
        # w_ref : SMEM (9,) f32  -- flattened 3x3 kernel (row-major, di*3+dj)
        # b_ref : SMEM (1,) f32  -- bias
        # x_ref : VMEM (nb, H*W)        -- nb flattened input planes, unpadded
        # o_ref : VMEM (nb, OH*W - 2)   -- nb flattened output planes
        l_out = o_ref.shape[-1]

        # Hoist the 9 weights + bias into scalars (scalar slot, otherwise idle).
        wts = [w_ref[i] for i in range(K * K)]
        bias = b_ref[0]

        # Three independent partial sums (one per kernel row) -> shorter
        # dependent add chains than a single 9-deep accumulation.
        # Each tap is a static-offset VMEM ref slice (rides the load path).
        partials = []
        for di in range(K):
            base = di * row_stride
            p = wts[di * K + 0] * x_ref[:, base:base + l_out]
            p = p + wts[di * K + 1] * x_ref[:, base + 1:base + 1 + l_out]
            p = p + wts[di * K + 2] * x_ref[:, base + 2:base + 2 + l_out]
            partials.append(p)
        acc = (partials[0] + partials[1]) + (partials[2] + bias)
        o_ref[...] = acc.astype(o_ref.dtype)

    return kernel


def conv2d_1x1ch_3x3(x_nchw, weight, bias):
    """x_nchw: (N, 1, H, W); weight: (1, 1, 3, 3); bias: (1,)."""
    n, c, h, w = x_nchw.shape
    assert c == 1, "this kernel is specialized for Conv2d(1, 1, 3)"
    oh, ow = h - K + 1, w - K + 1

    # Flattened-plane geometry (no spatial padding at all).  The largest valid
    # output flat index is (OH-1)*W + OW - 1 = OH*W - 3, and every tap read for
    # p < OH*W - 2 stays inside the H*W input plane, so:
    l_in = h * w
    l_out = oh * w - (K - 1)

    # Planes per grid block sized by a per-block (in+out) VMEM budget;
    # double buffering doubles it, and vmem_limit_bytes is set to match.
    bytes_per_plane = (l_in + l_out) * 4
    block_budget = 12 * 1024 * 1024
    if n * bytes_per_plane <= block_budget:
        nb = n                                           # one block, full batch
    else:
        nb = min(n, max(SUBLANE,
                        (block_budget // bytes_per_plane) // SUBLANE * SUBLANE))
    num_blocks = pl.cdiv(n, nb)

    # Only force >=2 parallel blocks on 2-TensorCore chips (v7x) and only when
    # the batch is big enough to keep dense (multiple-of-8) sublane blocks and
    # large DMAs; on 1-TC v5e/v6e a split would just add per-step overhead.
    if num_blocks == 1 and n >= 2 * SUBLANE and _is_multi_tc_chip():
        nb = max(SUBLANE, pl.cdiv(pl.cdiv(n, 2), SUBLANE) * SUBLANE)
        num_blocks = pl.cdiv(n, nb)

    # Contiguous reshape: no copy.  (Non-f32 inputs are upcast; bf16 could stay
    # native to halve input traffic -- minor, demo input is f32.)
    x_flat = x_nchw.reshape(n, l_in).astype(jnp.float32)
    w_flat = weight.reshape(K * K).astype(jnp.float32)
    b_flat = bias.reshape(1).astype(jnp.float32)

    block_bytes = nb * bytes_per_plane
    vmem_limit = max(32 * 1024 * 1024, 2 * block_bytes + (1 << 20))

    flops = 2 * K * K * num_blocks * nb * l_out
    bytes_accessed = (n * l_in + n * l_out + K * K + 1) * 4

    out_flat = pl.pallas_call(
        _make_conv3x3_flat_kernel(w),
        out_shape=jax.ShapeDtypeStruct((n, l_out), jnp.float32),
        grid_spec=pltpu.PrefetchScalarGridSpec(
            num_scalar_prefetch=0,
            grid=(num_blocks,),
            in_specs=[
                pl.BlockSpec(memory_space=pltpu.MemorySpace.SMEM),   # weights
                pl.BlockSpec(memory_space=pltpu.MemorySpace.SMEM),   # bias
                pl.BlockSpec((nb, l_in), lambda i: (i, 0)),          # x planes
            ],
            out_specs=pl.BlockSpec((nb, l_out), lambda i: (i, 0)),
        ),
        compiler_params=pltpu.CompilerParams(
            dimension_semantics=("parallel",),
            vmem_limit_bytes=vmem_limit),
        cost_estimate=pl.CostEstimate(
            flops=flops, transcendentals=0, bytes_accessed=bytes_accessed),
    )(w_flat, b_flat, x_flat)

    # Wrapper-side layout glue only: append the 2 missing junk columns so the
    # flat plane reshapes into rows of stride W, then drop the K-1 junk
    # columns per row (these fuse into one small XLA op).
    out = jnp.pad(out_flat, ((0, 0), (0, oh * w - l_out)))
    out = out.reshape(n, oh, w)[:, :, :ow]
    return out.reshape(n, 1, oh, ow).astype(x_nchw.dtype)


def _reference_conv(x_nchw, weight, bias):
    """Pure-JAX reference for correctness checking."""
    return jax.lax.conv_general_dilated(
        x_nchw, weight, window_strides=(1, 1), padding="VALID",
        dimension_numbers=("NCHW", "OIHW", "NCHW")) + bias.reshape(1, 1, 1, 1)


if __name__ == "__main__":
    key = jax.random.PRNGKey(0)
    k_x, k_w, k_b = jax.random.split(key, 3)

    # Small NCHW input consistent with Conv2d(1, 1, 3): batch=2, C=1, 16x16.
    x = jax.random.normal(k_x, (2, 1, 16, 16), dtype=jnp.float32)

    # Deterministic params, matching PyTorch's default Conv2d init range:
    # uniform(-1/sqrt(fan_in), 1/sqrt(fan_in)) with fan_in = 1*3*3 = 9.
    bound = 1.0 / jnp.sqrt(9.0)
    weight = jax.random.uniform(k_w, (1, 1, 3, 3), jnp.float32, -bound, bound)
    bias = jax.random.uniform(k_b, (1,), jnp.float32, -bound, bound)

    conv = jax.jit(conv2d_1x1ch_3x3)
    out = jax.block_until_ready(conv(x, weight, bias))

    ref = _reference_conv(x, weight, bias)
    assert out.shape == (2, 1, 14, 14), out.shape
    assert jnp.allclose(out, ref, atol=1e-5, rtol=1e-5), "mismatch vs reference"

    print("KERNEL_OK")
</pallas_src>

<mosaic_0001>
module attributes {stable_mosaic.version = 11 : i64} {
  func.func @kernel(%arg0: i32, %arg1: memref<9xf32, #tpu.memory_space<smem>>, %arg2: memref<1xf32, #tpu.memory_space<smem>>, %arg3: memref<2x256xf32, #tpu.memory_space<vmem>>, %arg4: memref<2x222xf32, #tpu.memory_space<vmem>>) attributes {dimension_semantics = [#tpu.dimension_semantics<parallel>], iteration_bounds = array<i64: 1>, scalar_prefetch = 0 : i64, scratch_operands = 0 : i64, tpu.core_type = #tpu.core_type<tc>, window_params = [{transform_indices = @transform_0, window_bounds = array<i64: 9>}, {transform_indices = @transform_1, window_bounds = array<i64: 1>}, {transform_indices = @transform_2, window_bounds = array<i64: 2, 256>}, {transform_indices = @transform_3, window_bounds = array<i64: 2, 222>}]} {
    %c0 = arith.constant 0 : index
    %0 = memref.load %arg1[%c0] : memref<9xf32, #tpu.memory_space<smem>>
    %c1 = arith.constant 1 : index
    %1 = memref.load %arg1[%c1] : memref<9xf32, #tpu.memory_space<smem>>
    %c2 = arith.constant 2 : index
    %2 = memref.load %arg1[%c2] : memref<9xf32, #tpu.memory_space<smem>>
    %c3 = arith.constant 3 : index
    %3 = memref.load %arg1[%c3] : memref<9xf32, #tpu.memory_space<smem>>
    %c4 = arith.constant 4 : index
    %4 = memref.load %arg1[%c4] : memref<9xf32, #tpu.memory_space<smem>>
    %c5 = arith.constant 5 : index
    %5 = memref.load %arg1[%c5] : memref<9xf32, #tpu.memory_space<smem>>
    %c6 = arith.constant 6 : index
    %6 = memref.load %arg1[%c6] : memref<9xf32, #tpu.memory_space<smem>>
    %c7 = arith.constant 7 : index
    %7 = memref.load %arg1[%c7] : memref<9xf32, #tpu.memory_space<smem>>
    %c8 = arith.constant 8 : index
    %8 = memref.load %arg1[%c8] : memref<9xf32, #tpu.memory_space<smem>>
    %c0_0 = arith.constant 0 : index
    %9 = memref.load %arg2[%c0_0] : memref<1xf32, #tpu.memory_space<smem>>
    %c0_1 = arith.constant 0 : index
    %c0_2 = arith.constant 0 : index
    %10 = vector.load %arg3[%c0_1, %c0_2] : memref<2x256xf32, #tpu.memory_space<vmem>>, vector<2x222xf32>
    %11 = vector.broadcast %0 : f32 to vector<2x222xf32>
    %12 = arith.mulf %11, %10 : vector<2x222xf32>
    %c0_3 = arith.constant 0 : index
    %c1_4 = arith.constant 1 : index
    %13 = vector.load %arg3[%c0_3, %c1_4] : memref<2x256xf32, #tpu.memory_space<vmem>>, vector<2x222xf32>
    %14 = vector.broadcast %1 : f32 to vector<2x222xf32>
    %15 = arith.mulf %14, %13 : vector<2x222xf32>
    %16 = arith.addf %12, %15 : vector<2x222xf32>
    %c0_5 = arith.constant 0 : index
    %c2_6 = arith.constant 2 : index
    %17 = vector.load %arg3[%c0_5, %c2_6] : memref<2x256xf32, #tpu.memory_space<vmem>>, vector<2x222xf32>
    %18 = vector.broadcast %2 : f32 to vector<2x222xf32>
    %19 = arith.mulf %18, %17 : vector<2x222xf32>
    %20 = arith.addf %16, %19 : vector<2x222xf32>
    %c0_7 = arith.constant 0 : index
    %c16 = arith.constant 16 : index
    %21 = vector.load %arg3[%c0_7, %c16] : memref<2x256xf32, #tpu.memory_space<vmem>>, vector<2x222xf32>
    %22 = vector.broadcast %3 : f32 to vector<2x222xf32>
    %23 = arith.mulf %22, %21 : vector<2x222xf32>
    %c0_8 = arith.constant 0 : index
    %c17 = arith.constant 17 : index
    %24 = vector.load %arg3[%c0_8, %c17] : memref<2x256xf32, #tpu.memory_space<vmem>>, vector<2x222xf32>
    %25 = vector.broadcast %4 : f32 to vector<2x222xf32>
    %26 = arith.mulf %25, %24 : vector<2x222xf32>
    %27 = arith.addf %23, %26 : vector<2x222xf32>
    %c0_9 = arith.constant 0 : index
    %c18 = arith.constant 18 : index
    %28 = vector.load %arg3[%c0_9, %c18] : memref<2x256xf32, #tpu.memory_space<vmem>>, vector<2x222xf32>
    %29 = vector.broadcast %5 : f32 to vector<2x222xf32>
    %30 = arith.mulf %29, %28 : vector<2x222xf32>
    %31 = arith.addf %27, %30 : vector<2x222xf32>
    %c0_10 = arith.constant 0 : index
    %c32 = arith.constant 32 : index
    %32 = vector.load %arg3[%c0_10, %c32] : memref<2x256xf32, #tpu.memory_space<vmem>>, vector<2x222xf32>
    %33 = vector.broadcast %6 : f32 to vector<2x222xf32>
    %34 = arith.mulf %33, %32 : vector<2x222xf32>
    %c0_11 = arith.constant 0 : index
    %c33 = arith.constant 33 : index
    %35 = vector.load %arg3[%c0_11, %c33] : memref<2x256xf32, #tpu.memory_space<vmem>>, vector<2x222xf32>
    %36 = vector.broadcast %7 : f32 to vector<2x222xf32>
    %37 = arith.mulf %36, %35 : vector<2x222xf32>
    %38 = arith.addf %34, %37 : vector<2x222xf32>
    %c0_12 = arith.constant 0 : index
    %c34 = arith.constant 34 : index
    %39 = vector.load %arg3[%c0_12, %c34] : memref<2x256xf32, #tpu.memory_space<vmem>>, vector<2x222xf32>
    %40 = vector.broadcast %8 : f32 to vector<2x222xf32>
    %41 = arith.mulf %40, %39 : vector<2x222xf32>
    %42 = arith.addf %38, %41 : vector<2x222xf32>
    %43 = arith.addf %20, %31 : vector<2x222xf32>
    %44 = vector.broadcast %9 : f32 to vector<2x222xf32>
    %45 = arith.addf %42, %44 : vector<2x222xf32>
    %46 = arith.addf %43, %45 : vector<2x222xf32>
    %c0_13 = arith.constant 0 : index
    %c0_14 = arith.constant 0 : index
    %47 = vector.load %arg4[%c0_13, %c0_14] : memref<2x222xf32, #tpu.memory_space<vmem>>, vector<2x222xf32>
    tpu.vector_store %arg4[%c0_13, %c0_14], %46 {strides = array<i32>} : memref<2x222xf32, #tpu.memory_space<vmem>>, vector<2x222xf32>,
    return
  }
  func.func @transform_0(%arg0: i32) -> i32 {
    %c0_i32 = arith.constant 0 : i32
    %c0_i32_0 = arith.constant 0 : i32
    return %c0_i32 : i32
  }
  func.func @transform_1(%arg0: i32) -> i32 {
    %c0_i32 = arith.constant 0 : i32
    %c0_i32_0 = arith.constant 0 : i32
    return %c0_i32 : i32
  }
  func.func @transform_2(%arg0: i32) -> (i32, i32) {
    %c0_i32 = arith.constant 0 : i32
    %c0_i32_0 = arith.constant 0 : i32
    return %arg0, %c0_i32 : i32, i32
  }
  func.func @transform_3(%arg0: i32) -> (i32, i32) {
    %c0_i32 = arith.constant 0 : i32
    %c0_i32_0 = arith.constant 0 : i32
    return %arg0, %c0_i32 : i32, i32
  }
}

</mosaic_0001>

<bundles_post_ra>
// kernel: conv2d_1x1ch_3x3.1
= control target key start
LH: loop header
LB: loop body
LE: loop exit
PB: predicated region body
PF: predicated region fallthrough
CT: control target
= control target key end

     0   :  { %9 = vsyncpa [#allocation4], 0  ;;  %s198_s0 = inlined_call_operand.vmem [shape: f32[9], index: 0, kind: input, shape index: {}]   ;;  %s199_s1 = inlined_call_operand.<no memory space> [shape: f32[1], index: 1, kind: input, shape index: {}]   ;;  %s200_s2 = inlined_call_operand.vmem [shape: f32[2,256], index: 2, kind: input, shape index: {}]   ;;  %s201_s3 = inlined_call_operand.vmem [shape: f32[2,222], index: 3, kind: output, shape index: {}]  }
   0x1   :  { %s16_s14 = sshll.u32 %s198_s0, 4  ;;  %s17_s14 = int_to_ptr.vmem [resolvable:$true] %s16_s14 }
   0x2   :  { %s141_s15 = scalar_lea.vmem %s17_s14, 16  ;;  %p146_p1 = scmp.lt.s32.totalorder %s17_s14, %s17_s14 }
   0x3   :  { %p142_p0 = scmp.ne.s32.totalorder %s17_s14, %s141_s15  ;;  %p147_p2 = scmp.lt.s32.totalorder %s141_s15, %s141_s15 }
   0x5   :  { %p148_p3 = por %p147_p2, %p146_p1 }
   0x7   :  { %p149_p4 = pnand %p148_p3, %p142_p0 }
   0x9   :  { %152 = shalt.err (!%p149_p4)
}
   0xa   :  { %s155_s16 = smov [#allocation3]  }
   0xb   :  { %19 = dma.vmem_to_smem %s17_s14, 16, %s155_s16, [#allocation4]  }
   0xc   :  { %153 = dma.done.wait [#allocation4], 16  }
   0xd   :  { %154 = vsyncadd [#allocation4], 4294967280 }
   0xe   :  { %27 = sfence }
   0xf   :  { %s132_s17 = sld [smem:[#allocation3 + $0x5]]  ;;  %s131_s18 = sld [smem:[#allocation3 + $0x4]]  ;;  %v38_v0 = vld [vmem:[%s200_s2] sm:$0xf]  ;;  %vm47_vm0 = vcmask 1039360   ;;  %vm57_vm1 = vcmask 1031168   ;;  %v109_v37 = vstv %s199_s1 }
  0x10   :  { %s135_s19 = sld [smem:[#allocation3 + $0x8]]  ;;  %s134_s20 = sld [smem:[#allocation3 + $0x7]]  ;;  %vm105_vm2 = vcmask 916480   ;;  %vm115_vm3 = vcmask 785408   ;;  %vm119_vm4 = vcmask 1041408   ;;  %vm120_vm5 = vcmask 764930  }
  0x11   :  { %s128_s0 = sld [smem:[#allocation3 + $0x1]]  ;;  %s129_s23 = sld [smem:[#allocation3 + $0x2]]  ;;  %vm121_vm6 = vmor %vm120_vm5, %vm119_vm4 }
  0x12   :  { %s156_s24 = smov 126   ;;  %s157_s25 = smov 127  }
  0x13   :  { %s130_s2 = sld [smem:[#allocation3 + $0x3]]  ;;  %s133_s26 = sld [smem:[#allocation3 + $0x6]] }
  0x14   :  { %s28_s27 = sld [smem:[#allocation3]]  ;;  %s158_s28 = smov 112  }
  0x15   :  { %v72_v1 = vstv %s132_s17  ;;  %v63_v3 = vstv %s131_s18  ;;  %s159_s4 = smov 96  }
  0x16   :  { %v73_v2 = vmul.f32 %v72_v1, %v38_v0  ;;  %v64_v4 = vmul.f32 %v63_v3, %v38_v0  ;;  %v92_v5 = vstv %s135_s19  ;;  %v83_v6 = vstv %s134_s20 }
  0x17   :  { %v93_v7 = vmul.f32 %v92_v5, %v38_v0  ;;  %v84_v8 = vmul.f32 %v83_v6, %v38_v0  ;;  %v51_v9 = vstv %s129_s23  ;;  %v41_v10 = vstv %s128_s0 }
  0x18   :  { %75 = vrot.lane.b32.xlu1 %v73_v2, %s156_s24  ;;  %66 = vrot.lane.b32.xlu0 %v64_v4, %s157_s25  ;;  %v52_v11 = vmul.f32 %v51_v9, %v38_v0  ;;  %v42_v12 = vmul.f32 %v41_v10, %v38_v0 }
  0x19   :  { %v61_v13 = vstv %s130_s2  ;;  %v81_v19 = vstv %s133_s26 }
  0x1a   :  { %v62_v16 = vmul.f32 %v61_v13, %v38_v0  ;;  %v82_v23 = vmul.f32 %v81_v19, %v38_v0  ;;  %v39_v28 = vstv %s28_s27 }
  0x1b   :  { %v40_v34 = vmul.f32 %v39_v28, %v38_v0 }
  0x1c   :  { %95 = vrot.lane.b32.xlu1 %v93_v7, %s156_s24  ;;  %86 = vrot.lane.b32.xlu0 %v84_v8, %s157_s25 }
  0x20   :  { %54 = vrot.lane.b32.xlu1 %v52_v11, %s156_s24  ;;  %44 = vrot.lane.b32.xlu0 %v42_v12, %s157_s25 }
  0x8a   :  { %v76_v14 = vpop.permute.xlu1 %75  ;;  %v67_v15 = vpop.permute.xlu0 %66 }
  0x8b   :  { %v77_v17 = vrot.slane %v76_v14, 2  ;;  %v68_v18 = vrot.slane %v67_v15, 2 }
  0x8d   :  { %v69_v20 = vsel %vm47_vm0, %v67_v15, %v68_v18  ;;  %v78_v25 = vsel %vm57_vm1, %v76_v14, %v77_v17 }
  0x8e   :  { %v96_v21 = vpop.permute.xlu1 %95  ;;  %v71_v22 = vadd.f32 %v69_v20, %v62_v16  ;;  %v87_v24 = vpop.permute.xlu0 %86 }
  0x8f   :  { %v97_v26 = vrot.slane %v96_v21, 2  ;;  %v88_v27 = vrot.slane %v87_v24, 2 }
  0x90   :  { %v80_v29 = vadd.f32 %v78_v25, %v71_v22 }
  0x91   :  { %v89_v30 = vsel %vm47_vm0, %v87_v24, %v88_v27  ;;  %v98_v36 = vsel %vm57_vm1, %v96_v21, %v97_v26 }
  0x92   :  { %v55_v31 = vpop.permute.xlu1 %54  ;;  %v91_v32 = vadd.f32 %v89_v30, %v82_v23  ;;  %102 = vrot.lane.b32.xlu0 %v80_v29, %s158_s28  ;;  %v45_v33 = vpop.permute.xlu0 %44 }
  0x93   :  { %v56_v35 = vrot.slane %v55_v31, 2  ;;  %v46_v38 = vrot.slane %v45_v33, 2 }
  0x94   :  { %v100_v39 = vadd.f32 %v98_v36, %v91_v32 }
  0x95   :  { %v48_v40 = vsel %vm47_vm0, %v45_v33, %v46_v38  ;;  %v58_v41 = vsel %vm57_vm1, %v55_v31, %v56_v35 }
  0x96   :  { %v110_v42 = vadd.f32 %v109_v37, %v100_v39  ;;  %v50_v43 = vadd.f32 %v48_v40, %v40_v34 }
  0x98   :  { %112 = vrot.lane.b32.xlu1 %v110_v42, %s159_s4  ;;  %v60_v44 = vadd.f32 %v58_v41, %v50_v43 }
 0x104   :  { %v103_v45 = vpop.permute.xlu0 %102 }
 0x105   :  { %v104_v46 = vrot.slane %v103_v45, 2 }
 0x107   :  { %v106_v47 = vsel %vm105_vm2, %v103_v45, %v104_v46 }
 0x108   :  { %v108_v50 = vadd.f32 %v106_v47, %v60_v44 }
 0x10a   :  { %v113_v48 = vpop.permute.xlu1 %112 }
 0x10b   :  { %v114_v49 = vrot.slane %v113_v48, 2 }
 0x10d   :  { %v116_v51 = vsel %vm115_vm3, %v113_v48, %v114_v49 }
 0x10e   :  { %v118_v52 = vadd.f32 %v116_v51, %v108_v50 }
 0x110   :  { %122 = vst.msk [vmem:[%s201_s3] sm:$0xf] %vm121_vm6, %v118_v52 }
 0x111   :  { %127 = vsyncpa [#allocation4], 1 }

</bundles_post_ra>
